<compile_context>
chip_gen: v6e
topology: v6e:2x2x1
jax: 0.10.0
libtpu: 0.0.40
codegen_flags: <defaults>
</compile_context>

<pallas_src>
from functools import partial

import numpy as np
import jax
import jax.numpy as jnp
from jax.experimental import pallas as pl
from jax.experimental.pallas import tpu as pltpu

LANES = 128  # lane-dense output width for the property head


def molecular_gnn_kernel(feat_ref, adj_ref, pool_ref, w_fp_ref, b_fp_ref,
                         w_out_ref, b_out_ref, w_prop_ref, b_prop_ref,
                         pred_ref, *, layer_hidden, layer_output, bf16_adj_matmul):
    # One grid step == one group of G molecules.
    # feat_ref: [G*S, dim] f32 node features; adj_ref: [G*S, G*S] bf16 block-diag (I + A).
    v = feat_ref[...]                                   # [GS, dim]
    adj = adj_ref[...]                                  # [GS, GS] bf16; 0/1/2 entries exact
    if not bf16_adj_matmul:
        adj = adj.astype(jnp.float32)

    # GNN layers: h = relu(v W + b); h = (I + A) h  (== h + A h); v = l2_normalize(h)
    for l in range(layer_hidden):
        h = jnp.dot(v, w_fp_ref[l], preferred_element_type=jnp.float32) + b_fp_ref[l]
        h = jnp.maximum(h, 0.0)
        if bf16_adj_matmul:
            # v5e-friendly bf16 x bf16 MXU path (perturbs h by ~2^-8; loosen tolerances).
            h = jnp.dot(adj, h.astype(jnp.bfloat16), preferred_element_type=jnp.float32)
        else:
            h = jnp.dot(adj, h, preferred_element_type=jnp.float32)
        ss = jnp.sum(h * h, axis=1, keepdims=True)
        v = h * jax.lax.rsqrt(jnp.maximum(ss, 1e-24))   # == h / max(||h||_2, 1e-12)

    # Per-molecule sum pooling for the whole group via a 0/1 pooling matrix (MXU).
    # Padding rows of (I + A) are all-zero, so their v rows are exactly zero here.
    x = jnp.dot(pool_ref[...], v, preferred_element_type=jnp.float32)   # [Gp, dim]

    for l in range(layer_output):
        x = jnp.dot(x, w_out_ref[l], preferred_element_type=jnp.float32) + b_out_ref[l]
        x = jnp.maximum(x, 0.0)

    # Lane-dense head: [Gp, 128] with real per-molecule rows (unmasked store).
    pred_ref[...] = (jnp.dot(x, w_prop_ref[...], preferred_element_type=jnp.float32)
                     + b_prop_ref[...])


def molecular_gnn_forward(fingerprints_list, adjacency_list, embed,
                          w_fp, b_fp, w_out, b_out, w_prop, b_prop,
                          target_rows=128, bf16_adj_matmul=False):
    """fingerprints_list: list of int32 [sz_b]; adjacency_list: list of f32 [sz_b, sz_b] 0/1."""
    B = len(fingerprints_list)
    n_fp, dim = embed.shape
    n_cls = w_prop.shape[1]
    layer_hidden = w_fp.shape[0]
    layer_output = w_out.shape[0]

    sizes = [int(np.asarray(f).shape[0]) for f in fingerprints_list]
    S = max(8, -(-max(sizes) // 8) * 8)      # per-molecule slot, multiple of 8 sublanes
    G = max(1, target_rows // S)             # molecules per grid step; G*S ~= MXU width
    GS = G * S
    Gp = max(8, -(-G // 8) * 8)              # sublane-aligned row count of the output block
    num_groups = -(-B // G)

    # ---- host-side numpy packing: O(1) device dispatches ----
    # TODO(synk): bin-pack molecules by actual size instead of padding each to S.
    adj_np = np.zeros((num_groups * GS, GS), np.float32)
    fp_idx = np.full((num_groups * GS,), n_fp, np.int32)   # pad id -> appended zero embedding row
    pool_np = np.zeros((Gp, GS), np.float32)
    for m in range(G):
        pool_np[m, m * S:(m + 1) * S] = 1.0
    for i in range(B):
        g, m = divmod(i, G)
        sz = sizes[i]
        r = m * S
        a = np.asarray(adjacency_list[i], np.float32)
        # residual folded: (I + A) on the real sz x sz block; pad rows/cols stay all-zero
        adj_np[g * GS + r: g * GS + r + sz, r: r + sz] = a + np.eye(sz, dtype=np.float32)
        fp_idx[g * GS + r: g * GS + r + sz] = np.asarray(fingerprints_list[i], np.int32)

    embed_pad = jnp.concatenate([embed, jnp.zeros((1, dim), embed.dtype)], axis=0)
    feat = jnp.take(embed_pad, jnp.asarray(fp_idx), axis=0)      # single device gather
    adj_hat = jnp.asarray(adj_np).astype(jnp.bfloat16)           # {0,1,2} exact; halves DMA/VMEM
    pool = jnp.asarray(pool_np)

    # Lane-dense property head: pad n_cls -> 128 lanes, slice after the call.
    w_prop_p = jnp.zeros((dim, LANES), jnp.float32).at[:, :n_cls].set(w_prop)
    b_prop_p = jnp.zeros((1, LANES), jnp.float32).at[:, :n_cls].set(b_prop)
    b_fp3 = b_fp.reshape(layer_hidden, 1, dim)
    b_out3 = b_out.reshape(layer_output, 1, dim)

    kernel = partial(molecular_gnn_kernel, layer_hidden=layer_hidden,
                     layer_output=layer_output, bf16_adj_matmul=bf16_adj_matmul)

    def full_spec(a):
        nd = a.ndim
        return pl.BlockSpec(a.shape, lambda g: (0,) * nd)  # whole array, resident across grid

    pred_pad = pl.pallas_call(
        kernel,
        out_shape=jax.ShapeDtypeStruct((num_groups * Gp, LANES), jnp.float32),
        grid=(num_groups,),
        in_specs=[
            pl.BlockSpec((GS, dim), lambda g: (g, 0)),   # this group's node features
            pl.BlockSpec((GS, GS), lambda g: (g, 0)),    # this group's block-diag (I + A)
            full_spec(pool),
            full_spec(w_fp), full_spec(b_fp3),
            full_spec(w_out), full_spec(b_out3),
            full_spec(w_prop_p), full_spec(b_prop_p),
        ],
        out_specs=pl.BlockSpec((Gp, LANES), lambda g: (g, 0)),
        compiler_params=pltpu.CompilerParams(
            dimension_semantics=("parallel",)),  # megacore on v7x; no-op on v5e/v6e
    )(feat, adj_hat, pool, w_fp, b_fp3, w_out, b_out3, w_prop_p, b_prop_p)

    # Gather real per-molecule rows and trim the padded class lanes.
    row_idx = np.array([(i // G) * Gp + (i % G) for i in range(B)], np.int32)
    return pred_pad[jnp.asarray(row_idx), :n_cls]


def ref_forward(fingerprints, adj_dense, seg, embed,
                w_fp, b_fp, w_out, b_out, w_prop, b_prop):
    """Pure-JAX reference matching the PyTorch forward semantics (dense formulation)."""
    v = embed[fingerprints]
    for l in range(w_fp.shape[0]):
        h = jax.nn.relu(v @ w_fp[l] + b_fp[l])
        h = h + adj_dense @ h
        v = h / jnp.maximum(jnp.linalg.norm(h, axis=1, keepdims=True), 1e-12)
    x = seg @ v
    for l in range(w_out.shape[0]):
        x = jax.nn.relu(x @ w_out[l] + b_out[l])
    return x @ w_prop + b_prop


if __name__ == "__main__":
    # ---- config (task='classification') ----
    N_fingerprints = 20
    dim = 32
    layer_hidden = 2
    layer_output = 2
    n_classes = 2
    molecular_sizes = [6, 10, 5, 12, 9, 4, 7, 11, 8, 6,
                       10, 5, 9, 7, 12, 6, 8, 10, 4, 11]   # 20 molecules -> 3 grid steps
    B = len(molecular_sizes)
    N = sum(molecular_sizes)

    key = jax.random.PRNGKey(0)
    (k_fp, k_adj, k_emb, k_wfp, k_bfp,
     k_wout, k_bout, k_wprop, k_bprop, k_y) = jax.random.split(key, 10)

    # ---- synthetic per-molecule data (the list-of-tensors a data_batch would carry) ----
    fp_all = jax.random.randint(k_fp, (N,), 0, N_fingerprints)
    adj_keys = jax.random.split(k_adj, B)
    fingerprints_list, adjacency_list = [], []
    off = 0
    for i, sz in enumerate(molecular_sizes):
        fingerprints_list.append(fp_all[off:off + sz])
        a = (jax.random.uniform(adj_keys[i], (sz, sz)) > 0.5).astype(jnp.float32)
        a = jnp.maximum(a, a.T)
        adjacency_list.append(a)
        off += sz

    # dense block-diagonal adjacency + pooling matrix (used only by the pure-JAX reference)
    adj_dense_np = np.zeros((N, N), np.float32)
    seg_np = np.zeros((B, N), np.float32)
    off = 0
    for b, sz in enumerate(molecular_sizes):
        adj_dense_np[off:off + sz, off:off + sz] = np.asarray(adjacency_list[b])
        seg_np[b, off:off + sz] = 1.0
        off += sz
    adj_dense = jnp.asarray(adj_dense_np)
    seg = jnp.asarray(seg_np)

    # ---- deterministic parameter init (shapes from __init__; Linear weights pre-transposed) ----
    embed = jax.random.normal(k_emb, (N_fingerprints, dim), jnp.float32)            # nn.Embedding
    w_fp = 0.1 * jax.random.normal(k_wfp, (layer_hidden, dim, dim), jnp.float32)    # W_fingerprint
    b_fp = 0.1 * jax.random.normal(k_bfp, (layer_hidden, dim), jnp.float32)
    w_out = 0.1 * jax.random.normal(k_wout, (layer_output, dim, dim), jnp.float32)  # W_output
    b_out = 0.1 * jax.random.normal(k_bout, (layer_output, dim), jnp.float32)
    w_prop = 0.1 * jax.random.normal(k_wprop, (dim, n_classes), jnp.float32)        # W_property
    b_prop = 0.1 * jax.random.normal(k_bprop, (1, n_classes), jnp.float32)

    y_true = jax.random.randint(k_y, (B,), 0, n_classes)

    # ---- run the Pallas kernel ----
    pred = molecular_gnn_forward(fingerprints_list, adjacency_list, embed,
                                 w_fp, b_fp, w_out, b_out, w_prop, b_prop)
    pred = jax.block_until_ready(pred)

    # ---- check against pure-JAX reference ----
    pred_ref = ref_forward(fp_all, adj_dense, seg, embed,
                           w_fp, b_fp, w_out, b_out, w_prop, b_prop)
    assert pred.shape == (B, n_classes)
    assert jnp.allclose(pred, pred_ref, rtol=1e-4, atol=1e-4), "mismatch vs reference"

    # cross-entropy loss (glue, matches F.cross_entropy for classification)
    # TODO(synk): loss / training branch stays outside the kernel; trivial reduction over [B, 2].
    logp = jax.nn.log_softmax(pred, axis=-1)
    loss = -jnp.mean(logp[jnp.arange(B), y_true])
    jax.block_until_ready(loss)

    print("KERNEL_OK")
</pallas_src>

<mosaic_0001>
module attributes {stable_mosaic.version = 11 : i64} {
  func.func @molecular_gnn_kernel(%arg0: i32, %arg1: memref<128x32xf32, #tpu.memory_space<vmem>>, %arg2: memref<128x128xbf16, #tpu.memory_space<vmem>>, %arg3: memref<8x128xf32, #tpu.memory_space<vmem>>, %arg4: memref<2x32x32xf32, #tpu.memory_space<vmem>>, %arg5: memref<2x1x32xf32, #tpu.memory_space<vmem>>, %arg6: memref<2x32x32xf32, #tpu.memory_space<vmem>>, %arg7: memref<2x1x32xf32, #tpu.memory_space<vmem>>, %arg8: memref<32x128xf32, #tpu.memory_space<vmem>>, %arg9: memref<1x128xf32, #tpu.memory_space<vmem>>, %arg10: memref<8x128xf32, #tpu.memory_space<vmem>>) attributes {dimension_semantics = [#tpu.dimension_semantics<parallel>], iteration_bounds = array<i64: 3>, scalar_prefetch = 0 : i64, scratch_operands = 0 : i64, tpu.core_type = #tpu.core_type<tc>, window_params = [{transform_indices = @transform_0, window_bounds = array<i64: 128, 32>}, {transform_indices = @transform_1, window_bounds = array<i64: 128, 128>}, {pipeline_mode = #tpu.pipeline_mode<synchronous>, transform_indices = @transform_2, window_bounds = array<i64: 8, 128>}, {pipeline_mode = #tpu.pipeline_mode<synchronous>, transform_indices = @transform_3, window_bounds = array<i64: 2, 32, 32>}, {pipeline_mode = #tpu.pipeline_mode<synchronous>, transform_indices = @transform_4, window_bounds = array<i64: 2, 1, 32>}, {pipeline_mode = #tpu.pipeline_mode<synchronous>, transform_indices = @transform_5, window_bounds = array<i64: 2, 32, 32>}, {pipeline_mode = #tpu.pipeline_mode<synchronous>, transform_indices = @transform_6, window_bounds = array<i64: 2, 1, 32>}, {pipeline_mode = #tpu.pipeline_mode<synchronous>, transform_indices = @transform_7, window_bounds = array<i64: 32, 128>}, {pipeline_mode = #tpu.pipeline_mode<synchronous>, transform_indices = @transform_8, window_bounds = array<i64: 1, 128>}, {transform_indices = @transform_9, window_bounds = array<i64: 8, 128>}]} {
    %c0 = arith.constant 0 : index
    %c0_0 = arith.constant 0 : index
    %0 = vector.load %arg1[%c0, %c0_0] : memref<128x32xf32, #tpu.memory_space<vmem>>, vector<128x32xf32>
    %c0_1 = arith.constant 0 : index
    %c0_2 = arith.constant 0 : index
    %1 = vector.load %arg2[%c0_1, %c0_2] : memref<128x128xbf16, #tpu.memory_space<vmem>>, vector<128x128xbf16>
    %2 = arith.extf %1 : vector<128x128xbf16> to vector<128x128xf32>
    %c0_3 = arith.constant 0 : index
    %c0_4 = arith.constant 0 : index
    %c0_5 = arith.constant 0 : index
    %3 = vector.load %arg4[%c0_3, %c0_4, %c0_5] : memref<2x32x32xf32, #tpu.memory_space<vmem>>, vector<1x32x32xf32>
    %4 = vector.shape_cast %3 : vector<1x32x32xf32> to vector<32x32xf32>
    %cst = arith.constant dense<0.000000e+00> : vector<128x32xf32>
    %5 = tpu.matmul %0, %4, %cst {dimension_numbers = #tpu.dot_dimension_numbers<[1], [0], [0], [1], [0, 0, 1, 1], [], []>} : vector<128x32xf32>, vector<32x32xf32>, vector<128x32xf32> -> vector<128x32xf32>
    %c0_6 = arith.constant 0 : index
    %c0_7 = arith.constant 0 : index
    %c0_8 = arith.constant 0 : index
    %6 = vector.load %arg5[%c0_6, %c0_7, %c0_8] : memref<2x1x32xf32, #tpu.memory_space<vmem>>, vector<1x1x32xf32>
    %7 = vector.shape_cast %6 : vector<1x1x32xf32> to vector<1x32xf32>
    %8 = vector.broadcast %7 : vector<1x32xf32> to vector<128x32xf32>
    %9 = arith.addf %5, %8 : vector<128x32xf32>
    %cst_9 = arith.constant 0.000000e+00 : f32
    %10 = vector.broadcast %cst_9 : f32 to vector<128x32xf32>
    %11 = arith.maximumf %9, %10 : vector<128x32xf32>
    %cst_10 = arith.constant dense<0.000000e+00> : vector<128x32xf32>
    %12 = tpu.matmul %2, %11, %cst_10 {dimension_numbers = #tpu.dot_dimension_numbers<[1], [0], [0], [1], [0, 0, 1, 1], [], []>} : vector<128x128xf32>, vector<128x32xf32>, vector<128x32xf32> -> vector<128x32xf32>
    %13 = arith.mulf %12, %12 : vector<128x32xf32>
    %cst_11 = arith.constant dense<0.000000e+00> : vector<128xf32>
    %14 = vector.multi_reduction <add>, %13, %cst_11 [1] : vector<128x32xf32> to vector<128xf32>
    %15 = vector.shape_cast %14 : vector<128xf32> to vector<128x1xf32>
    %cst_12 = arith.constant 1.000000e-24 : f32
    %16 = vector.broadcast %cst_12 : f32 to vector<128x1xf32>
    %17 = arith.maximumf %15, %16 : vector<128x1xf32>
    %18 = math.rsqrt %17 : vector<128x1xf32>
    %19 = vector.broadcast %18 : vector<128x1xf32> to vector<128x32xf32>
    %20 = arith.mulf %12, %19 : vector<128x32xf32>
    %c1 = arith.constant 1 : index
    %c0_13 = arith.constant 0 : index
    %c0_14 = arith.constant 0 : index
    %21 = vector.load %arg4[%c1, %c0_13, %c0_14] : memref<2x32x32xf32, #tpu.memory_space<vmem>>, vector<1x32x32xf32>
    %22 = vector.shape_cast %21 : vector<1x32x32xf32> to vector<32x32xf32>
    %cst_15 = arith.constant dense<0.000000e+00> : vector<128x32xf32>
    %23 = tpu.matmul %20, %22, %cst_15 {dimension_numbers = #tpu.dot_dimension_numbers<[1], [0], [0], [1], [0, 0, 1, 1], [], []>} : vector<128x32xf32>, vector<32x32xf32>, vector<128x32xf32> -> vector<128x32xf32>
    %c1_16 = arith.constant 1 : index
    %c0_17 = arith.constant 0 : index
    %c0_18 = arith.constant 0 : index
    %24 = vector.load %arg5[%c1_16, %c0_17, %c0_18] : memref<2x1x32xf32, #tpu.memory_space<vmem>>, vector<1x1x32xf32>
    %25 = vector.shape_cast %24 : vector<1x1x32xf32> to vector<1x32xf32>
    %26 = vector.broadcast %25 : vector<1x32xf32> to vector<128x32xf32>
    %27 = arith.addf %23, %26 : vector<128x32xf32>
    %cst_19 = arith.constant 0.000000e+00 : f32
    %28 = vector.broadcast %cst_19 : f32 to vector<128x32xf32>
    %29 = arith.maximumf %27, %28 : vector<128x32xf32>
    %cst_20 = arith.constant dense<0.000000e+00> : vector<128x32xf32>
    %30 = tpu.matmul %2, %29, %cst_20 {dimension_numbers = #tpu.dot_dimension_numbers<[1], [0], [0], [1], [0, 0, 1, 1], [], []>} : vector<128x128xf32>, vector<128x32xf32>, vector<128x32xf32> -> vector<128x32xf32>
    %31 = arith.mulf %30, %30 : vector<128x32xf32>
    %cst_21 = arith.constant dense<0.000000e+00> : vector<128xf32>
    %32 = vector.multi_reduction <add>, %31, %cst_21 [1] : vector<128x32xf32> to vector<128xf32>
    %33 = vector.shape_cast %32 : vector<128xf32> to vector<128x1xf32>
    %cst_22 = arith.constant 1.000000e-24 : f32
    %34 = vector.broadcast %cst_22 : f32 to vector<128x1xf32>
    %35 = arith.maximumf %33, %34 : vector<128x1xf32>
    %36 = math.rsqrt %35 : vector<128x1xf32>
    %37 = vector.broadcast %36 : vector<128x1xf32> to vector<128x32xf32>
    %38 = arith.mulf %30, %37 : vector<128x32xf32>
    %c0_23 = arith.constant 0 : index
    %c0_24 = arith.constant 0 : index
    %39 = vector.load %arg3[%c0_23, %c0_24] : memref<8x128xf32, #tpu.memory_space<vmem>>, vector<8x128xf32>
    %cst_25 = arith.constant dense<0.000000e+00> : vector<8x32xf32>
    %40 = tpu.matmul %39, %38, %cst_25 {dimension_numbers = #tpu.dot_dimension_numbers<[1], [0], [0], [1], [0, 0, 1, 1], [], []>} : vector<8x128xf32>, vector<128x32xf32>, vector<8x32xf32> -> vector<8x32xf32>
    %c0_26 = arith.constant 0 : index
    %c0_27 = arith.constant 0 : index
    %c0_28 = arith.constant 0 : index
    %41 = vector.load %arg6[%c0_26, %c0_27, %c0_28] : memref<2x32x32xf32, #tpu.memory_space<vmem>>, vector<1x32x32xf32>
    %42 = vector.shape_cast %41 : vector<1x32x32xf32> to vector<32x32xf32>
    %cst_29 = arith.constant dense<0.000000e+00> : vector<8x32xf32>
    %43 = tpu.matmul %40, %42, %cst_29 {dimension_numbers = #tpu.dot_dimension_numbers<[1], [0], [0], [1], [0, 0, 1, 1], [], []>} : vector<8x32xf32>, vector<32x32xf32>, vector<8x32xf32> -> vector<8x32xf32>
    %c0_30 = arith.constant 0 : index
    %c0_31 = arith.constant 0 : index
    %c0_32 = arith.constant 0 : index
    %44 = vector.load %arg7[%c0_30, %c0_31, %c0_32] : memref<2x1x32xf32, #tpu.memory_space<vmem>>, vector<1x1x32xf32>
    %45 = vector.shape_cast %44 : vector<1x1x32xf32> to vector<1x32xf32>
    %46 = vector.broadcast %45 : vector<1x32xf32> to vector<8x32xf32>
    %47 = arith.addf %43, %46 : vector<8x32xf32>
    %cst_33 = arith.constant 0.000000e+00 : f32
    %48 = vector.broadcast %cst_33 : f32 to vector<8x32xf32>
    %49 = arith.maximumf %47, %48 : vector<8x32xf32>
    %c1_34 = arith.constant 1 : index
    %c0_35 = arith.constant 0 : index
    %c0_36 = arith.constant 0 : index
    %50 = vector.load %arg6[%c1_34, %c0_35, %c0_36] : memref<2x32x32xf32, #tpu.memory_space<vmem>>, vector<1x32x32xf32>
    %51 = vector.shape_cast %50 : vector<1x32x32xf32> to vector<32x32xf32>
    %cst_37 = arith.constant dense<0.000000e+00> : vector<8x32xf32>
    %52 = tpu.matmul %49, %51, %cst_37 {dimension_numbers = #tpu.dot_dimension_numbers<[1], [0], [0], [1], [0, 0, 1, 1], [], []>} : vector<8x32xf32>, vector<32x32xf32>, vector<8x32xf32> -> vector<8x32xf32>
    %c1_38 = arith.constant 1 : index
    %c0_39 = arith.constant 0 : index
    %c0_40 = arith.constant 0 : index
    %53 = vector.load %arg7[%c1_38, %c0_39, %c0_40] : memref<2x1x32xf32, #tpu.memory_space<vmem>>, vector<1x1x32xf32>
    %54 = vector.shape_cast %53 : vector<1x1x32xf32> to vector<1x32xf32>
    %55 = vector.broadcast %54 : vector<1x32xf32> to vector<8x32xf32>
    %56 = arith.addf %52, %55 : vector<8x32xf32>
    %cst_41 = arith.constant 0.000000e+00 : f32
    %57 = vector.broadcast %cst_41 : f32 to vector<8x32xf32>
    %58 = arith.maximumf %56, %57 : vector<8x32xf32>
    %c0_42 = arith.constant 0 : index
    %c0_43 = arith.constant 0 : index
    %59 = vector.load %arg8[%c0_42, %c0_43] : memref<32x128xf32, #tpu.memory_space<vmem>>, vector<32x128xf32>
    %cst_44 = arith.constant dense<0.000000e+00> : vector<8x128xf32>
    %60 = tpu.matmul %58, %59, %cst_44 {dimension_numbers = #tpu.dot_dimension_numbers<[1], [0], [0], [1], [0, 0, 1, 1], [], []>} : vector<8x32xf32>, vector<32x128xf32>, vector<8x128xf32> -> vector<8x128xf32>
    %c0_45 = arith.constant 0 : index
    %c0_46 = arith.constant 0 : index
    %61 = vector.load %arg9[%c0_45, %c0_46] : memref<1x128xf32, #tpu.memory_space<vmem>>, vector<1x128xf32>
    %62 = vector.broadcast %61 : vector<1x128xf32> to vector<8x128xf32>
    %63 = arith.addf %60, %62 : vector<8x128xf32>
    %c0_47 = arith.constant 0 : index
    %c0_48 = arith.constant 0 : index
    %64 = vector.load %arg10[%c0_47, %c0_48] : memref<8x128xf32, #tpu.memory_space<vmem>>, vector<8x128xf32>
    tpu.vector_store %arg10[%c0_47, %c0_48], %63 {strides = array<i32>} : memref<8x128xf32, #tpu.memory_space<vmem>>, vector<8x128xf32>,
    return
  }
  func.func @transform_0(%arg0: i32) -> (i32, i32) {
    %c0_i32 = arith.constant 0 : i32
    %c0_i32_0 = arith.constant 0 : i32
    return %arg0, %c0_i32 : i32, i32
  }
  func.func @transform_1(%arg0: i32) -> (i32, i32) {
    %c0_i32 = arith.constant 0 : i32
    %c0_i32_0 = arith.constant 0 : i32
    return %arg0, %c0_i32 : i32, i32
  }
  func.func @transform_2(%arg0: i32) -> (i32, i32) {
    %c0_i32 = arith.constant 0 : i32
    %c0_i32_0 = arith.constant 0 : i32
    %c0_i32_1 = arith.constant 0 : i32
    return %c0_i32, %c0_i32_0 : i32, i32
  }
  func.func @transform_3(%arg0: i32) -> (i32, i32, i32) {
    %c0_i32 = arith.constant 0 : i32
    %c0_i32_0 = arith.constant 0 : i32
    %c0_i32_1 = arith.constant 0 : i32
    %c0_i32_2 = arith.constant 0 : i32
    return %c0_i32, %c0_i32_0, %c0_i32_1 : i32, i32, i32
  }
  func.func @transform_4(%arg0: i32) -> (i32, i32, i32) {
    %c0_i32 = arith.constant 0 : i32
    %c0_i32_0 = arith.constant 0 : i32
    %c0_i32_1 = arith.constant 0 : i32
    %c0_i32_2 = arith.constant 0 : i32
    return %c0_i32, %c0_i32_0, %c0_i32_1 : i32, i32, i32
  }
  func.func @transform_5(%arg0: i32) -> (i32, i32, i32) {
    %c0_i32 = arith.constant 0 : i32
    %c0_i32_0 = arith.constant 0 : i32
    %c0_i32_1 = arith.constant 0 : i32
    %c0_i32_2 = arith.constant 0 : i32
    return %c0_i32, %c0_i32_0, %c0_i32_1 : i32, i32, i32
  }
  func.func @transform_6(%arg0: i32) -> (i32, i32, i32) {
    %c0_i32 = arith.constant 0 : i32
    %c0_i32_0 = arith.constant 0 : i32
    %c0_i32_1 = arith.constant 0 : i32
    %c0_i32_2 = arith.constant 0 : i32
    return %c0_i32, %c0_i32_0, %c0_i32_1 : i32, i32, i32
  }
  func.func @transform_7(%arg0: i32) -> (i32, i32) {
    %c0_i32 = arith.constant 0 : i32
    %c0_i32_0 = arith.constant 0 : i32
    %c0_i32_1 = arith.constant 0 : i32
    return %c0_i32, %c0_i32_0 : i32, i32
  }
  func.func @transform_8(%arg0: i32) -> (i32, i32) {
    %c0_i32 = arith.constant 0 : i32
    %c0_i32_0 = arith.constant 0 : i32
    %c0_i32_1 = arith.constant 0 : i32
    return %c0_i32, %c0_i32_0 : i32, i32
  }
  func.func @transform_9(%arg0: i32) -> (i32, i32) {
    %c0_i32 = arith.constant 0 : i32
    %c0_i32_0 = arith.constant 0 : i32
    return %arg0, %c0_i32 : i32, i32
  }
}

</mosaic_0001>

<bundles_post_ra>
// kernel: tpu_custom_call.1
= control target key start
LH: loop header
LB: loop body
LE: loop exit
PB: predicated region body
PF: predicated region fallthrough
CT: control target
= control target key end

     0   :  { %14 = vsyncpa [#allocation3], 0  ;;  %s3051_s0 = inlined_call_operand.vmem [shape: f32[384,32], index: 0, kind: input, shape index: {}]   ;;  %s3052_s1 = inlined_call_operand.vmem [shape: bf16[384,128], index: 1, kind: input, shape index: {}]   ;;  %s3053_s2 = inlined_call_operand.vmem [shape: f32[8,128], index: 2, kind: input, shape index: {}]   ;;  %s3054_s3 = inlined_call_operand.vmem [shape: f32[2,32,32], index: 3, kind: input, shape index: {}]   ;;  %s3055_s4 = inlined_call_operand.vmem [shape: f32[2,1,32], index: 4, kind: input, shape index: {}]   ;;  %s3056_s5 = inlined_call_operand.vmem [shape: f32[2,32,32], index: 5, kind: input, shape index: {}]   ;;  %s3057_s6 = inlined_call_operand.vmem [shape: f32[2,1,32], index: 6, kind: input, shape index: {}]   ;;  %s3058_s7 = inlined_call_operand.vmem [shape: f32[32,128], index: 7, kind: input, shape index: {}]   ;;  %s3059_s8 = inlined_call_operand.vmem [shape: f32[1,128], index: 8, kind: input, shape index: {}]   ;;  %s3060_s9 = inlined_call_operand.hbm [shape: f32[24,128], index: 9, kind: output, shape index: {}]  }
   0x1   :  { %16 = vsyncpa [#allocation3 + $0x1], 0  ;;  %s2475_s30 = smov 0   ;;  %s2477_s10 = smov 0  }
   0x2   :  { %s2479_s11 = smov 0   ;;  %s2481_s12 = smov 0  }
   0x3 LB: > { %s2496_s13 = sadd.s32 4294967295, %s2420_s12   ;;  %s1773_s14 = sadd.s32 4294967294, %s2420_s12   ;;  %s2420_s12 = sphi %s2481_s12, %s3066_s12   ;;  %s2416_s11 = sphi %s2479_s11, %s3065_s11   ;;  %s2412_s10 = sphi %s2477_s10, %s3064_s10   ;;  %s2408_s30 = sphi %s2475_s30, %s3063_s30  }
   0x4   : > { %s2500_s15 = sadd.s32 1, %s2420_s12   ;;  %s228_s16 = sadd.s32 1, %s2416_s11 }
   0x5   : > { %s225_s17 = ssub.s32 %s2420_s12, %s2500_s15  ;;  %p238_p0 = scmp.ne.s32.totalorder %s2416_s11, %s2412_s10 }
   0x6   : > { %p226_p1 = scmp.eq.s32.totalorder %s225_s17, 0  ;;  %p239_p2 = scmp.eq.s32.totalorder %s2496_s13, 2 }
   0x7   : > { %p244_p3 = scmp.ne.s32.totalorder %s2412_s10, %s2408_s30  ;;  %p245_p4 = scmp.eq.s32.totalorder %s1773_s14, 2 }
   0x8   : > { %s2511_s18 = scalar_select %p226_p1, %s2416_s11, %s228_s16  }
   0x9   : > { %p2513_p5 = por %p239_p2, %p238_p0  ;;  %p2517_p6 = por %p245_p4, %p244_p3 }
   0xa   : > { %p1776_p7 = scmp.ge.s32.totalorder %s2420_s12, 1  ;;  %p302_p8 = scmp.lt.s32.totalorder %s2420_s12, 4 }
   0xc   : > { %p303_p9 = pnand %p1776_p7, %p302_p8 }
   0xd   : > { %s1778_s25 = sshll.u32 (!%p303_p9), %s2496_s13, 4  ;;  %s340_s17 = sand.u32 (!%p303_p9), 1, %s2412_s10  }
   0xe   : > { %306 = sbr.rel (%p303_p9) target bundleno = 2106 (0x83a), region = 56  ;;  %p344_p10 = scmp.lt.s32.totalorder (!%p303_p9), %s1778_s25, 47 }
   0xf   : > { %s1833_s24 = sshll.u32 (!%p303_p9), %s2496_s13, 7 }
  0x10   : > { %s3016_s29 = scalar_lea.hbm (!%p303_p9), %s3060_s9, %s1833_s24 }
  0x13   : > { %v406_v0 = vld [vmem:[%s3054_s3 + $0x18] sm:$0xff]  ;;  %v405_v1 = vld [vmem:[%s3054_s3 + $0x10] sm:$0xff]  ;;  %v404_v2 = vld [vmem:[%s3054_s3 + $0x8] sm:$0xff]  ;;  %s3068_s25 = smov (!%p344_p10, %s1778_s25), 47  ;;  %vm414_vm0 = vcmask 261120   ;;  %vm2423_vm1 = vmmov 0  }
  0x14   : > { %2011 = vmatprep.subr.mxu0 %v406_v0  ;;  %v403_v3 = vld [vmem:[%s3054_s3] sm:$0xff]  ;;  %s1779_s14 = sshll.u32 %s3068_s25, 3  ;;  %s1781_s22 = sshll.u32 %s3068_s25, 2 }
  0x15   : > { %2012 = vmatpush3.msra.mxu0 %v406_v0  ;;  %s2542_s21 = scalar_lea.vmem %s3051_s0, %s1779_s14  ;;  %s2580_s26 = scalar_lea.vmem %s3052_s1, %s1781_s22  ;;  %v1782_v36 = vld [vmem:[%s3055_s4] ss:$0 sm:$0xff] }
  0x16   : > { %2013 = vmatprep.subr.mxu0 %v405_v1  ;;  %v355_v4 = vld [vmem:[%s2542_s21] sm:$0xff]  ;;  %v356_v5 = vld [vmem:[%s2542_s21 + $0x8] sm:$0xff]  ;;  %v357_v6 = vld [vmem:[%s2542_s21 + $0x10] sm:$0xff]  ;;  %s1689_s14 = scalar_lea.sflag [#allocation3], %s340_s17  ;;  %s2424_s22 = smov [#allocation2]  }
  0x17   : > { %2014 = vmatpush3.msra.mxu0 %v405_v1  ;;  %2019 = vmatprep.mubr.msk.f32.mxu0 %vm414_vm0, %v355_v4  ;;  %v358_v7 = vld [vmem:[%s2542_s21 + $0x18] sm:$0xff]  ;;  %v359_v8 = vld [vmem:[%s2542_s21 + $0x20] sm:$0xff]  ;;  %v360_v9 = vld [vmem:[%s2542_s21 + $0x28] sm:$0xff]  ;;  %s2364_s13 = sshll.u32 %s2424_s22, 4  ;;  %s2365_s13 = int_to_ptr.vmem [resolvable:$false] %s2364_s13 }
  0x18   : > { %2015 = vmatprep.subr.mxu0 %v404_v2  ;;  %v361_v10 = vld [vmem:[%s2542_s21 + $0x30] sm:$0xff]  ;;  %v362_v11 = vld [vmem:[%s2542_s21 + $0x38] sm:$0xff]  ;;  %v363_v12 = vld [vmem:[%s2542_s21 + $0x40] sm:$0xff] }
  0x19   : > { %2016 = vmatpush3.msra.mxu0 %v404_v2  ;;  %v364_v13 = vld [vmem:[%s2542_s21 + $0x48] sm:$0xff]  ;;  %v365_v14 = vld [vmem:[%s2542_s21 + $0x50] sm:$0xff]  ;;  %v366_v15 = vld [vmem:[%s2542_s21 + $0x58] sm:$0xff] }
  0x1a   : > { %2017 = vmatprep.subr.mxu0 %v403_v3  ;;  %v367_v16 = vld [vmem:[%s2542_s21 + $0x60] sm:$0xff]  ;;  %v368_v17 = vld [vmem:[%s2542_s21 + $0x68] sm:$0xff]  ;;  %v369_v18 = vld [vmem:[%s2542_s21 + $0x70] sm:$0xff] }
  0x1b   : > { %2018 = vmatpush3.msra.mxu0 %v403_v3  ;;  %v370_v19 = vld [vmem:[%s2542_s21 + $0x78] sm:$0xff]  ;;  %v2583_v20 = vld [vmem:[%s2580_s26] sm:$0xff]   ;;  %s1777_s21 = sshll.u32 %s340_s17, 3 }
  0x1c   : > { %2020 = vmatmul.mubr.msk.f32.vlgmr.msra.gmra.mxu0 %vm414_vm0, %v356_v5  ;;  %v1838_v21 = vunpack.c.l.bf16 %v2583_v20 }
  0x1d   : > { %2022 = vmatprep.mubr.msk.f32.mxu0 %vm414_vm0, %v357_v6  ;;  %v2598_v6 = vld [vmem:[%s2580_s26 + $0x8] sm:$0xff]  }
  0x1e   : > { %2075 = vmatprep.mubr.f32.mxu1 %v1838_v21 }
  0x20   : > { %2023 = vmatmul.mubr.msk.f32.gmra.mxu0 %vm414_vm0, %v358_v7 }
  0x21   : > { %2025 = vmatprep.mubr.msk.f32.mxu0 %vm414_vm0, %v359_v8  ;;  %v1839_v8 = vunpack.c.h.bf16 %v2583_v20 }
  0x24   : > { %2026 = vmatmul.mubr.msk.f32.gmra.mxu0 %vm414_vm0, %v360_v9  ;;  %v1842_v9 = vunpack.c.l.bf16 %v2598_v6 }
  0x25   : > { %2028 = vmatprep.mubr.msk.f32.mxu0 %vm414_vm0, %v361_v10  ;;  %v2603_v10 = vld [vmem:[%s2580_s26 + $0x10] sm:$0xff]  }
  0x28   : > { %2029 = vmatmul.mubr.msk.f32.gmra.mxu0 %vm414_vm0, %v362_v11  ;;  %v1843_v11 = vunpack.c.h.bf16 %v2598_v6 }
  0x29   : > { %2031 = vmatprep.mubr.msk.f32.mxu0 %vm414_vm0, %v363_v12  ;;  %v1846_v12 = vunpack.c.l.bf16 %v2603_v10 }
  0x2c   : > { %2032 = vmatmul.mubr.msk.f32.gmra.mxu0 %vm414_vm0, %v364_v13  ;;  %v2612_v13 = vld [vmem:[%s2580_s26 + $0x18] sm:$0xff]  }
  0x2d   : > { %2034 = vmatprep.mubr.msk.f32.mxu0 %vm414_vm0, %v365_v14  ;;  %v1847_v14 = vunpack.c.h.bf16 %v2603_v10 }
  0x30   : > { %2035 = vmatmul.mubr.msk.f32.gmra.mxu0 %vm414_vm0, %v366_v15  ;;  %v1850_v15 = vunpack.c.l.bf16 %v2612_v13 }
  0x31   : > { %2037 = vmatprep.mubr.msk.f32.mxu0 %vm414_vm0, %v367_v16  ;;  %v2621_v16 = vld [vmem:[%s2580_s26 + $0x20] sm:$0xff]  }
  0x34   : > { %2038 = vmatmul.mubr.msk.f32.gmra.mxu0 %vm414_vm0, %v368_v17  ;;  %v1851_v17 = vunpack.c.h.bf16 %v2612_v13 }
  0x35   : > { %2040 = vmatprep.mubr.msk.f32.mxu0 %vm414_vm0, %v369_v18  ;;  %v1854_v18 = vunpack.c.l.bf16 %v2621_v16 }
  0x38   : > { %2041 = vmatmul.mubr.msk.f32.gmra.mxu0 %vm414_vm0, %v370_v19  ;;  %v2630_v19 = vld [vmem:[%s2580_s26 + $0x28] sm:$0xff]  }
  0xdc   : > { %v2588_v22 = vpop.f32.mrf.mxu0 }
  0xdd   : > { %v535_v1 = vadd.f32 %v2588_v22, %v1782_v36  ;;  %v1855_v22 = vunpack.c.h.bf16 %v2621_v16 }
  0xde   : > { %v2590_v23 = vpop.f32.mrf.mxu0 }
  0xdf   : > { %v530_v3 = vadd.f32 %v1782_v36, %v2590_v23  ;;  %v609_v5 = vmax.f32 %v535_v1, 0.0  ;;  %v1858_v23 = vunpack.c.l.bf16 %v2630_v19 }
  0xe0   : > { %v2024_v24 = vpop.f32.mrf.mxu0 }
  0xe1   : > { %v545_v61 = vadd.f32 %v2024_v24, %v1782_v36  ;;  %v608_v7 = vmax.f32 %v530_v3, 0.0  ;;  %v2639_v24 = vld [vmem:[%s2580_s26 + $0x30] sm:$0xff]  }
  0xe2   : > { %v539_v25 = vpop.f32.mrf.mxu0 }
  0xe3   : > { %v540_v63 = vadd.f32 %v1782_v36, %v539_v25  ;;  %v611_v2 = vmax.f32 %v545_v61, 0.0  ;;  %v1859_v25 = vunpack.c.h.bf16 %v2630_v19 }
  0xe4   : > { %v2027_v26 = vpop.f32.mrf.mxu0 }
  0xe5   : > { %v555_v57 = vadd.f32 %v2027_v26, %v1782_v36  ;;  %v610_v4 = vmax.f32 %v540_v63, 0.0  ;;  %v1862_v26 = vunpack.c.l.bf16 %v2639_v24 }
  0xe6   : > { %v549_v27 = vpop.f32.mrf.mxu0 }
  0xe7   : > { %v550_v59 = vadd.f32 %v1782_v36, %v549_v27  ;;  %v613_v62 = vmax.f32 %v555_v57, 0.0  ;;  %v2648_v27 = vld [vmem:[%s2580_s26 + $0x38] sm:$0xff]   ;;  %s342_s26 = scalar_lea.vmem [#allocation2], %s1777_s21  ;;  %s2366_s21 = scalar_lea.vmem %s2365_s13, 256 }
  0xe8   : > { %v2030_v28 = vpop.f32.mrf.mxu0  ;;  %s1702_s25 = sshll.u32 %s342_s26, 4  ;;  %s1703_s25 = int_to_ptr.vmem [resolvable:$true] %s1702_s25 }
  0xe9   : > { %v565_v53 = vadd.f32 %v2030_v28, %v1782_v36  ;;  %v612_v0 = vmax.f32 %v550_v59, 0.0  ;;  %v1863_v28 = vunpack.c.h.bf16 %v2639_v24  ;;  %s2360_s16 = scalar_lea.vmem %s1703_s25, 128  ;;  %p2367_p0 = scmp.lt.s32.totalorder %s1703_s25, %s2365_s13 }
  0xea   : > { %v559_v29 = vpop.f32.mrf.mxu0  ;;  %p2361_p11 = scmp.ne.s32.totalorder %s1703_s25, %s2360_s16  ;;  %p2368_p1 = scmp.lt.s32.totalorder %s2366_s21, %s2360_s16 }
  0xeb   : > { %v560_v55 = vadd.f32 %v1782_v36, %v559_v29  ;;  %v615_v58 = vmax.f32 %v565_v53, 0.0  ;;  %v1866_v29 = vunpack.c.l.bf16 %v2648_v27 }
  0xec   : > { %v2033_v30 = vpop.f32.mrf.mxu0  ;;  %p2362_p12 = pnand %p2361_p11, %p2513_p5  ;;  %p2369_p2 = por %p2368_p1, %p2367_p0 }
  0xed   : > { %v575_v49 = vadd.f32 %v2033_v30, %v1782_v36  ;;  %v614_v60 = vmax.f32 %v560_v55, 0.0  ;;  %v1867_v30 = vunpack.c.h.bf16 %v2648_v27 }
  0xee   : > { %v569_v31 = vpop.f32.mrf.mxu0  ;;  %p2363_p13 = pneg %p2362_p12 }
  0xef   : > { %v570_v51 = vadd.f32 %v1782_v36, %v569_v31  ;;  %v617_v54 = vmax.f32 %v575_v49, 0.0  ;;  %v1802_v31 = vld [vmem:[%s3054_s3 + $0x38] sm:$0xff] }
  0xf0   : > { %v2036_v32 = vpop.f32.mrf.mxu0  ;;  %2099 = vmatprep.subr.mxu0 %v1802_v31  ;;  %p2370_p3 = pnand %p2369_p2, %p2363_p13 }
  0xf1   : > { %v585_v45 = vadd.f32 %v2036_v32, %v1782_v36  ;;  %v616_v56 = vmax.f32 %v570_v51, 0.0  ;;  %v1801_v32 = vld [vmem:[%s3054_s3 + $0x30] sm:$0xff]  ;;  %2100 = vmatpush3.msra.mxu0 %v1802_v31 }
  0xf2   : > { %v579_v33 = vpop.f32.mrf.mxu0  ;;  %2101 = vmatprep.subr.mxu0 %v1801_v32 }
  0xf3   : > { %v580_v47 = vadd.f32 %v1782_v36, %v579_v33  ;;  %v619_v50 = vmax.f32 %v585_v45, 0.0  ;;  %2102 = vmatpush3.msra.mxu0 %v1801_v32 }
  0xf4   : > { %v2039_v34 = vpop.f32.mrf.mxu0 }
  0xf5   : > { %v595_v40 = vadd.f32 %v2039_v34, %v1782_v36  ;;  %v618_v52 = vmax.f32 %v580_v47, 0.0 }
  0xf6   : > { %v589_v35 = vpop.f32.mrf.mxu0 }
  0xf7   : > { %v590_v43 = vadd.f32 %v1782_v36, %v589_v35  ;;  %v621_v46 = vmax.f32 %v595_v40, 0.0 }
  0xf8   : > { %v2042_v37 = vpop.f32.mrf.mxu0 }
  0xf9   : > { %v605_v38 = vadd.f32 %v2042_v37, %v1782_v36  ;;  %v620_v48 = vmax.f32 %v590_v43, 0.0 }
  0xfa   : > { %v599_v39 = vpop.f32.mrf.mxu0 }
  0xfb   : > { %v623_v41 = vmax.f32 %v605_v38, 0.0  ;;  %v600_v42 = vadd.f32 %v1782_v36, %v599_v39 }
  0xfd   : > { %v622_v44 = vmax.f32 %v600_v42, 0.0  ;;  %2043 = vmatprep.subr.mxu1 %v623_v41 }
  0xfe   : > { %2044 = vmatpush3.msra.mxu1 %v623_v41 }
  0xff   : > { %2045 = vmatprep.subr.mxu1 %v622_v44 }
 0x100   : > { %2046 = vmatpush3.msra.mxu1 %v622_v44 }
 0x101   : > { %2047 = vmatprep.subr.mxu1 %v621_v46 }
 0x102   : > { %2048 = vmatpush3.msra.mxu1 %v621_v46 }
 0x103   : > { %2049 = vmatprep.subr.mxu1 %v620_v48 }
 0x104   : > { %2050 = vmatpush3.msra.mxu1 %v620_v48 }
 0x105   : > { %2051 = vmatprep.subr.mxu1 %v619_v50 }
 0x106   : > { %2052 = vmatpush3.msra.mxu1 %v619_v50 }
 0x107   : > { %2053 = vmatprep.subr.mxu1 %v618_v52 }
 0x108   : > { %2054 = vmatpush3.msra.mxu1 %v618_v52 }
 0x109   : > { %2055 = vmatprep.subr.mxu1 %v617_v54 }
 0x10a   : > { %2056 = vmatpush3.msra.mxu1 %v617_v54 }
 0x10b   : > { %2057 = vmatprep.subr.mxu1 %v616_v56 }
 0x10c   : > { %2058 = vmatpush3.msra.mxu1 %v616_v56 }
 0x10d   : > { %2059 = vmatprep.subr.mxu1 %v615_v58 }
 0x10e   : > { %2060 = vmatpush3.msra.mxu1 %v615_v58 }
 0x10f   : > { %2061 = vmatprep.subr.mxu1 %v614_v60 }
 0x110   : > { %2062 = vmatpush3.msra.mxu1 %v614_v60 }
 0x111   : > { %2063 = vmatprep.subr.mxu1 %v613_v62 }
 0x112   : > { %2064 = vmatpush3.msra.mxu1 %v613_v62 }
 0x113   : > { %2065 = vmatprep.subr.mxu1 %v612_v0 }
 0x114   : > { %2066 = vmatpush3.msra.mxu1 %v612_v0 }
 0x115   : > { %2067 = vmatprep.subr.mxu1 %v611_v2 }
 0x116   : > { %2068 = vmatpush3.msra.mxu1 %v611_v2 }
 0x117   : > { %2069 = vmatprep.subr.mxu1 %v610_v4 }
 0x118   : > { %2070 = vmatpush3.msra.mxu1 %v610_v4 }
 0x119   : > { %2071 = vmatprep.subr.mxu1 %v609_v5 }
 0x11a   : > { %2072 = vmatpush3.msra.mxu1 %v609_v5 }
 0x11b   : > { %2073 = vmatprep.subr.mxu1 %v608_v7 }
 0x11c   : > { %2074 = vmatpush3.msra.mxu1 %v608_v7 }
 0x11d   : > { %2076 = vmatmul.mubr.f32.vlgmr.msra.gmra.mxu1 %v1839_v8 }
 0x11e   : > { %2078 = vmatprep.mubr.f32.mxu1 %v1842_v9 }
 0x121   : > { %2079 = vmatmul.mubr.f32.gmra.mxu1 %v1843_v11 }
 0x122   : > { %2081 = vmatprep.mubr.f32.mxu1 %v1846_v12 }
 0x125   : > { %2082 = vmatmul.mubr.f32.gmra.mxu1 %v1847_v14 }
 0x126   : > { %2084 = vmatprep.mubr.f32.mxu1 %v1850_v15 }
 0x129   : > { %2085 = vmatmul.mubr.f32.gmra.mxu1 %v1851_v17 }
 0x12a   : > { %2087 = vmatprep.mubr.f32.mxu1 %v1854_v18 }
 0x12d   : > { %2088 = vmatmul.mubr.f32.gmra.mxu1 %v1855_v22 }
 0x12e   : > { %2090 = vmatprep.mubr.f32.mxu1 %v1858_v23 }
 0x131   : > { %2091 = vmatmul.mubr.f32.gmra.mxu1 %v1859_v25 }
 0x132   : > { %2093 = vmatprep.mubr.f32.mxu1 %v1862_v26 }
 0x135   : > { %2094 = vmatmul.mubr.f32.gmra.mxu1 %v1863_v28 }
 0x136   : > { %2096 = vmatprep.mubr.f32.mxu1 %v1866_v29 }
 0x139   : > { %2097 = vmatmul.mubr.f32.gmra.mxu1 %v1867_v30 }
 0x13a   : > { %2163 = vmatprep.mubr.f32.mxu1 %v1838_v21 }
 0x1dd   : > { %v2671_v33 = vpop.f32.mrf.mxu1 }
 0x1de   : > { %v770_v36 = vmul.f32 %v2671_v33, %v2671_v33 }
 0x1df   : > { %v2673_v34 = vpop.f32.mrf.mxu1 }
 0x1e0   : > { %v769_v35 = vmul.f32 %v2673_v34, %v2673_v34  ;;  %v788_v42 = vsel %vm414_vm0, %v770_v36, 0.0 }
 0x1e1   : > { %v2677_v21 = vpop.f32.mrf.mxu1 }
 0x1e2   : > { %v785_v37 = vsel %vm414_vm0, %v769_v35, 0.0  ;;  %v772_v41 = vmul.f32 %v2677_v21, %v2677_v21 }
 0x1e3   : > { %786 = vadd.xlane.f32.xlu0 %v785_v37  ;;  %v2682_v38 = vpop.f32.mrf.mxu1 }
 0x1e4   : > { %v771_v39 = vmul.f32 %v2682_v38, %v2682_v38  ;;  %v794_v48 = vsel %vm414_vm0, %v772_v41, 0.0 }
 0x1e5   : > { %v2686_v40 = vpop.f32.mrf.mxu1 }
 0x1e6   : > { %v791_v43 = vsel %vm414_vm0, %v771_v39, 0.0  ;;  %v774_v47 = vmul.f32 %v2686_v40, %v2686_v40 }
 0x1e7   : > { %789 = vadd.xlane.f32.xlu0 %v788_v42  ;;  %792 = vadd.xlane.f32.xlu1 %v791_v43  ;;  %v2692_v44 = vpop.f32.mrf.mxu1  ;;  %v1800_v43 = vld [vmem:[%s3054_s3 + $0x28] sm:$0xff] }
 0x1e8   : > { %v773_v45 = vmul.f32 %v2692_v44, %v2692_v44  ;;  %v800_v54 = vsel %vm414_vm0, %v774_v47, 0.0  ;;  %2103 = vmatprep.subr.mxu0 %v1800_v43 }
 0x1e9   : > { %v2696_v46 = vpop.f32.mrf.mxu1  ;;  %2104 = vmatpush3.msra.mxu0 %v1800_v43 }
 0x1ea   : > { %v797_v49 = vsel %vm414_vm0, %v773_v45, 0.0  ;;  %v776_v53 = vmul.f32 %v2696_v46, %v2696_v46  ;;  %v1799_v45 = vld [vmem:[%s3054_s3 + $0x20] sm:$0xff] }
 0x1eb   : > { %795 = vadd.xlane.f32.xlu1 %v794_v48  ;;  %798 = vadd.xlane.f32.xlu0 %v797_v49  ;;  %v2702_v50 = vpop.f32.mrf.mxu1 }
 0x1ec   : > { %v775_v51 = vmul.f32 %v2702_v50, %v2702_v50  ;;  %v806_v60 = vsel %vm414_vm0, %v776_v53, 0.0  ;;  %2105 = vmatprep.subr.mxu0 %v1799_v45 }
 0x1ed   : > { %v2706_v52 = vpop.f32.mrf.mxu1  ;;  %2106 = vmatpush3.msra.mxu0 %v1799_v45 }
 0x1ee   : > { %v803_v55 = vsel %vm414_vm0, %v775_v51, 0.0  ;;  %v778_v59 = vmul.f32 %v2706_v52, %v2706_v52 }
 0x1ef   : > { %801 = vadd.xlane.f32.xlu1 %v800_v54  ;;  %804 = vadd.xlane.f32.xlu0 %v803_v55  ;;  %v2712_v56 = vpop.f32.mrf.mxu1 }
 0x1f0   : > { %v777_v57 = vmul.f32 %v2712_v56, %v2712_v56  ;;  %v812_v2 = vsel %vm414_vm0, %v778_v59, 0.0 }
 0x1f1   : > { %v2716_v58 = vpop.f32.mrf.mxu1 }
 0x1f2   : > { %v809_v61 = vsel %vm414_vm0, %v777_v57, 0.0  ;;  %v780_v1 = vmul.f32 %v2716_v58, %v2716_v58 }
 0x1f3   : > { %807 = vadd.xlane.f32.xlu1 %v806_v60  ;;  %810 = vadd.xlane.f32.xlu0 %v809_v61  ;;  %v2722_v62 = vpop.f32.mrf.mxu1 }
 0x1f4   : > { %v779_v63 = vmul.f32 %v2722_v62, %v2722_v62  ;;  %v818_v32 = vsel %vm414_vm0, %v780_v1, 0.0 }
 0x1f5   : > { %v2726_v0 = vpop.f32.mrf.mxu1 }
 0x1f6   : > { %v815_v3 = vsel %vm414_vm0, %v779_v63, 0.0  ;;  %v782_v31 = vmul.f32 %v2726_v0, %v2726_v0 }
 0x1f7   : > { %813 = vadd.xlane.f32.xlu1 %v812_v2  ;;  %816 = vadd.xlane.f32.xlu0 %v815_v3  ;;  %v2732_v4 = vpop.f32.mrf.mxu1 }
 0x1f8   : > { %v781_v5 = vmul.f32 %v2732_v4, %v2732_v4  ;;  %v824_v41 = vsel %vm414_vm0, %v782_v31, 0.0 }
 0x1f9   : > { %v2736_v7 = vpop.f32.mrf.mxu1 }
 0x1fa   : > { %v821_v35 = vsel %vm414_vm0, %v781_v5, 0.0  ;;  %v784_v39 = vmul.f32 %v2736_v7, %v2736_v7 }
 0x1fb   : > { %819 = vadd.xlane.f32.xlu1 %v818_v32  ;;  %822 = vadd.xlane.f32.xlu0 %v821_v35  ;;  %v2742_v36 = vpop.f32.mrf.mxu1 }
 0x1fc   : > { %v783_v37 = vmul.f32 %v2742_v36, %v2742_v36  ;;  %v830_v47 = vsel %vm414_vm0, %v784_v39, 0.0 }
 0x1fe   : > { %v827_v42 = vsel %vm414_vm0, %v783_v37, 0.0 }
 0x1ff   : > { %825 = vadd.xlane.f32.xlu1 %v824_v41  ;;  %828 = vadd.xlane.f32.xlu0 %v827_v42 }
 0x203   : > { %831 = vadd.xlane.f32.xlu1 %v830_v47 }
 0x26c   : > { %v787_v48 = vpop.xlane.xlu0 %786 }
 0x26d   : > { %v833_v49 = vmax.f32 %v787_v48, 1e-24 }
 0x26f   : > { %2296 = vrsqrt.f32 %v833_v49 }
 0x270   : > { %v790_v51 = vpop.xlane.xlu0 %789  ;;  %v793_v53 = vpop.xlane.xlu1 %792 }
 0x271   : > { %v834_v54 = vmax.f32 %v790_v51, 1e-24  ;;  %v835_v55 = vmax.f32 %v793_v53, 1e-24 }
 0x273   : > { %2298 = vrsqrt.f32 %v834_v54 }
 0x274   : > { %2300 = vrsqrt.f32 %v835_v55  ;;  %v796_v57 = vpop.xlane.xlu1 %795  ;;  %v799_v59 = vpop.xlane.xlu0 %798 }
 0x275   : > { %v836_v60 = vmax.f32 %v796_v57, 1e-24  ;;  %v837_v61 = vmax.f32 %v799_v59, 1e-24 }
 0x277   : > { %2302 = vrsqrt.f32 %v836_v60 }
 0x278   : > { %2304 = vrsqrt.f32 %v837_v61  ;;  %v802_v63 = vpop.xlane.xlu1 %801  ;;  %v805_v1 = vpop.xlane.xlu0 %804 }
 0x279   : > { %v838_v2 = vmax.f32 %v802_v63, 1e-24  ;;  %v839_v3 = vmax.f32 %v805_v1, 1e-24 }
 0x27b   : > { %2306 = vrsqrt.f32 %v838_v2 }
 0x27c   : > { %v2297_v5 = vpop.eup %2296  ;;  %2308 = vrsqrt.f32 %v839_v3  ;;  %v808_v31 = vpop.xlane.xlu1 %807 }
 0x27d   : > { %v811_v32 = vpop.xlane.xlu0 %810  ;;  %v840_v35 = vmax.f32 %v808_v31, 1e-24  ;;  %v865_v39 = vmul.f32 %v2297_v5, %v2673_v34 }
 0x27e   : > { %v841_v37 = vmax.f32 %v811_v32, 1e-24 }
 0x27f   : > { %2310 = vrsqrt.f32 %v840_v35  ;;  %2107 = vmatprep.mubr.msk.f32.mxu0 %vm414_vm0, %v865_v39 }
 0x280   : > { %v2299_v41 = vpop.eup %2298  ;;  %2312 = vrsqrt.f32 %v841_v37  ;;  %v814_v42 = vpop.xlane.xlu1 %813 }
 0x281   : > { %v817_v43 = vpop.xlane.xlu0 %816  ;;  %v2301_v45 = vpop.eup %2300  ;;  %v866_v47 = vmul.f32 %v2299_v41, %v2671_v33  ;;  %v842_v48 = vmax.f32 %v814_v42, 1e-24 }
 0x282   : > { %v843_v49 = vmax.f32 %v817_v43, 1e-24  ;;  %v867_v51 = vmul.f32 %v2301_v45, %v2682_v38 }
 0x283   : > { %2314 = vrsqrt.f32 %v842_v48  ;;  %2108 = vmatmul.mubr.msk.f32.vlgmr.msra.gmra.mxu0 %vm414_vm0, %v866_v47 }
 0x284   : > { %v2303_v53 = vpop.eup %2302  ;;  %2316 = vrsqrt.f32 %v843_v49  ;;  %2110 = vmatprep.mubr.msk.f32.mxu0 %vm414_vm0, %v867_v51  ;;  %v820_v34 = vpop.xlane.xlu1 %819 }
 0x285   : > { %v823_v54 = vpop.xlane.xlu0 %822  ;;  %v2305_v55 = vpop.eup %2304  ;;  %v844_v57 = vmax.f32 %v820_v34, 1e-24  ;;  %v868_v60 = vmul.f32 %v2303_v53, %v2677_v21 }
 0x286   : > { %v845_v59 = vmax.f32 %v823_v54, 1e-24  ;;  %v869_v33 = vmul.f32 %v2305_v55, %v2692_v44 }
 0x287   : > { %2318 = vrsqrt.f32 %v844_v57  ;;  %2111 = vmatmul.mubr.msk.f32.gmra.mxu0 %vm414_vm0, %v868_v60 }
 0x288   : > { %v2307_v38 = vpop.eup %2306  ;;  %2320 = vrsqrt.f32 %v845_v59  ;;  %2113 = vmatprep.mubr.msk.f32.mxu0 %vm414_vm0, %v869_v33  ;;  %v826_v61 = vpop.xlane.xlu1 %825 }
 0x289   : > { %v829_v63 = vpop.xlane.xlu0 %828  ;;  %v2309_v1 = vpop.eup %2308  ;;  %v846_v2 = vmax.f32 %v826_v61, 1e-24  ;;  %v870_v5 = vmul.f32 %v2307_v38, %v2686_v40 }
 0x28a   : > { %v847_v3 = vmax.f32 %v829_v63, 1e-24  ;;  %v871_v31 = vmul.f32 %v2309_v1, %v2702_v50 }
 0x28b   : > { %2322 = vrsqrt.f32 %v846_v2  ;;  %2114 = vmatmul.mubr.msk.f32.gmra.mxu0 %vm414_vm0, %v870_v5 }
 0x28c   : > { %v2311_v21 = vpop.eup %2310  ;;  %2324 = vrsqrt.f32 %v847_v3  ;;  %2116 = vmatprep.mubr.msk.f32.mxu0 %vm414_vm0, %v871_v31  ;;  %v832_v44 = vpop.xlane.xlu1 %831 }
 0x28d   : > { %v2313_v32 = vpop.eup %2312  ;;  %v848_v35 = vmax.f32 %v832_v44, 1e-24  ;;  %v872_v37 = vmul.f32 %v2311_v21, %v2696_v46 }
 0x28e   : > { %v873_v39 = vmul.f32 %v2313_v32, %v2712_v56 }
 0x28f   : > { %2326 = vrsqrt.f32 %v848_v35  ;;  %2117 = vmatmul.mubr.msk.f32.gmra.mxu0 %vm414_vm0, %v872_v37 }
 0x290   : > { %v2315_v40 = vpop.eup %2314  ;;  %2119 = vmatprep.mubr.msk.f32.mxu0 %vm414_vm0, %v873_v39 }
 0x291   : > { %v2317_v50 = vpop.eup %2316  ;;  %v874_v41 = vmul.f32 %v2315_v40, %v2706_v52 }
 0x292   : > { %v875_v42 = vmul.f32 %v2317_v50, %v2722_v62 }
 0x293   : > { %2120 = vmatmul.mubr.msk.f32.gmra.mxu0 %vm414_vm0, %v874_v41 }
 0x294   : > { %v2319_v43 = vpop.eup %2318  ;;  %2122 = vmatprep.mubr.msk.f32.mxu0 %vm414_vm0, %v875_v42 }
 0x295   : > { %v2321_v45 = vpop.eup %2320  ;;  %v876_v46 = vmul.f32 %v2319_v43, %v2716_v58 }
 0x296   : > { %v877_v56 = vmul.f32 %v2321_v45, %v2732_v4 }
 0x297   : > { %2123 = vmatmul.mubr.msk.f32.gmra.mxu0 %vm414_vm0, %v876_v46 }
 0x298   : > { %v2323_v47 = vpop.eup %2322  ;;  %2125 = vmatprep.mubr.msk.f32.mxu0 %vm414_vm0, %v877_v56 }
 0x299   : > { %v2325_v48 = vpop.eup %2324  ;;  %v878_v52 = vmul.f32 %v2323_v47, %v2726_v0 }
 0x29a   : > { %v879_v62 = vmul.f32 %v2325_v48, %v2742_v36 }
 0x29b   : > { %2126 = vmatmul.mubr.msk.f32.gmra.mxu0 %vm414_vm0, %v878_v52 }
 0x29c   : > { %v2327_v49 = vpop.eup %2326  ;;  %2128 = vmatprep.mubr.msk.f32.mxu0 %vm414_vm0, %v879_v62 }
 0x29d   : > { %v880_v51 = vmul.f32 %v2327_v49, %v2736_v7  ;;  %v1804_v7 = vld [vmem:[%s3055_s4 + $0x1] ss:$0 sm:$0xff] }
 0x29f   : > { %2129 = vmatmul.mubr.msk.f32.gmra.mxu0 %vm414_vm0, %v880_v51 }
 0x343   : > { %v2789_v58 = vpop.f32.mrf.mxu0 }
 0x345   : > { %v2791_v4 = vpop.f32.mrf.mxu0 }
 0x347   : > { %v2112_v53 = vpop.f32.mrf.mxu0 }
 0x348   : > { %v1024_v49 = vadd.f32 %v2112_v53, %v1804_v7 }
 0x349   : > { %v1018_v34 = vpop.f32.mrf.mxu0 }
 0x34b   : > { %v2115_v54 = vpop.f32.mrf.mxu0 }
 0x34c   : > { %v1034_v47 = vadd.f32 %v2115_v54, %v1804_v7  ;;  %v1009_v54 = vadd.f32 %v1804_v7, %v2791_v4 }
 0x34d   : > { %v1028_v55 = vpop.f32.mrf.mxu0 }
 0x34e   : > { %v1029_v52 = vadd.f32 %v1804_v7, %v1028_v55  ;;  %v1092_v51 = vmax.f32 %v1034_v47, 0.0  ;;  %v1087_v53 = vmax.f32 %v1009_v54, 0.0 }
 0x34f   : > { %v2118_v0 = vpop.f32.mrf.mxu0 }
 0x350   : > { %v1044_v43 = vadd.f32 %v2118_v0, %v1804_v7  ;;  %v1019_v0 = vadd.f32 %v1804_v7, %v1018_v34 }
 0x351   : > { %v1038_v57 = vpop.f32.mrf.mxu0 }
 0x352   : > { %v1039_v46 = vadd.f32 %v1804_v7, %v1038_v57  ;;  %v1094_v48 = vmax.f32 %v1044_v43, 0.0  ;;  %v1014_v57 = vadd.f32 %v2789_v58, %v1804_v7 }
 0x353   : > { %v2121_v36 = vpop.f32.mrf.mxu0 }
 0x354   : > { %v1054_v40 = vadd.f32 %v2121_v36, %v1804_v7  ;;  %v1093_v62 = vmax.f32 %v1039_v46, 0.0  ;;  %v1091_v36 = vmax.f32 %v1029_v52, 0.0  ;;  %v1088_v55 = vmax.f32 %v1014_v57, 0.0 }
 0x355   : > { %v1048_v59 = vpop.f32.mrf.mxu0 }
 0x356   : > { %v1049_v41 = vadd.f32 %v1804_v7, %v1048_v59  ;;  %v1096_v45 = vmax.f32 %v1054_v40, 0.0  ;;  %v1090_v59 = vmax.f32 %v1024_v49, 0.0 }
 0x357   : > { %v2124_v60 = vpop.f32.mrf.mxu0 }
 0x358   : > { %v1064_v32 = vadd.f32 %v2124_v60, %v1804_v7  ;;  %v1095_v56 = vmax.f32 %v1049_v41, 0.0  ;;  %v1089_v60 = vmax.f32 %v1019_v0, 0.0 }
 0x359   : > { %v1058_v33 = vpop.f32.mrf.mxu0 }
 0x35a   : > { %v1059_v37 = vadd.f32 %v1804_v7, %v1058_v33  ;;  %v1098_v50 = vmax.f32 %v1064_v32, 0.0 }
 0x35b   : > { %v2127_v38 = vpop.f32.mrf.mxu0 }
 0x35c   : > { %v1074_v3 = vadd.f32 %v2127_v38, %v1804_v7  ;;  %v1097_v42 = vmax.f32 %v1059_v37, 0.0 }
 0x35d   : > { %v1068_v61 = vpop.f32.mrf.mxu0 }
 0x35e   : > { %v1069_v21 = vadd.f32 %v1804_v7, %v1068_v61  ;;  %v1100_v35 = vmax.f32 %v1074_v3, 0.0 }
 0x35f   : > { %v2130_v63 = vpop.f32.mrf.mxu0 }
 0x360   : > { %v1084_v1 = vadd.f32 %v2130_v63, %v1804_v7  ;;  %v1099_v39 = vmax.f32 %v1069_v21, 0.0 }
 0x361   : > { %v1078_v2 = vpop.f32.mrf.mxu0 }
 0x362   : > { %v1102_v5 = vmax.f32 %v1084_v1, 0.0  ;;  %v1079_v31 = vadd.f32 %v1804_v7, %v1078_v2 }
 0x364   : > { %v1101_v44 = vmax.f32 %v1079_v31, 0.0  ;;  %2131 = vmatprep.subr.mxu1 %v1102_v5 }
 0x365   : > { %2132 = vmatpush3.msra.mxu1 %v1102_v5 }
 0x366   : > { %2133 = vmatprep.subr.mxu1 %v1101_v44 }
 0x367   : > { %2134 = vmatpush3.msra.mxu1 %v1101_v44 }
 0x368   : > { %2135 = vmatprep.subr.mxu1 %v1100_v35 }
 0x369   : > { %2136 = vmatpush3.msra.mxu1 %v1100_v35 }
 0x36a   : > { %2137 = vmatprep.subr.mxu1 %v1099_v39 }
 0x36b   : > { %2138 = vmatpush3.msra.mxu1 %v1099_v39 }
 0x36c   : > { %2139 = vmatprep.subr.mxu1 %v1098_v50 }
 0x36d   : > { %2140 = vmatpush3.msra.mxu1 %v1098_v50 }
 0x36e   : > { %2141 = vmatprep.subr.mxu1 %v1097_v42 }
 0x36f   : > { %2142 = vmatpush3.msra.mxu1 %v1097_v42 }
 0x370   : > { %2143 = vmatprep.subr.mxu1 %v1096_v45 }
 0x371   : > { %2144 = vmatpush3.msra.mxu1 %v1096_v45  ;;  %v2422_v45 = vmov 0.0  }
 0x372   : > { %2145 = vmatprep.subr.mxu1 %v1095_v56  ;;  %2187 = vmatprep.subr.mxu0 %v2422_v45 }
 0x373   : > { %2146 = vmatpush3.msra.mxu1 %v1095_v56  ;;  %2219 = vmatprep.mubr.msk.f32.mxu0 %vm2423_vm1, %v2422_v45 }
 0x374   : > { %2147 = vmatprep.subr.mxu1 %v1094_v48 }
 0x375   : > { %2148 = vmatpush3.msra.mxu1 %v1094_v48 }
 0x376   : > { %2149 = vmatprep.subr.mxu1 %v1093_v62 }
 0x377   : > { %2150 = vmatpush3.msra.mxu1 %v1093_v62 }
 0x378   : > { %2151 = vmatprep.subr.mxu1 %v1092_v51 }
 0x379   : > { %2152 = vmatpush3.msra.mxu1 %v1092_v51 }
 0x37a   : > { %2153 = vmatprep.subr.mxu1 %v1091_v36 }
 0x37b   : > { %2154 = vmatpush3.msra.mxu1 %v1091_v36 }
 0x37c   : > { %2155 = vmatprep.subr.mxu1 %v1090_v59 }
 0x37d   : > { %2156 = vmatpush3.msra.mxu1 %v1090_v59 }
 0x37e   : > { %2157 = vmatprep.subr.mxu1 %v1089_v60 }
 0x37f   : > { %2158 = vmatpush3.msra.mxu1 %v1089_v60 }
 0x380   : > { %2159 = vmatprep.subr.mxu1 %v1088_v55 }
 0x381   : > { %2160 = vmatpush3.msra.mxu1 %v1088_v55 }
 0x382   : > { %2161 = vmatprep.subr.mxu1 %v1087_v53 }
 0x383   : > { %2162 = vmatpush3.msra.mxu1 %v1087_v53 }
 0x384   : > { %2164 = vmatmul.mubr.f32.vlgmr.msra.gmra.mxu1 %v1839_v8 }
 0x385   : > { %2166 = vmatprep.mubr.f32.mxu1 %v1842_v9 }
 0x388   : > { %2167 = vmatmul.mubr.f32.gmra.mxu1 %v1843_v11 }
 0x389   : > { %2169 = vmatprep.mubr.f32.mxu1 %v1846_v12 }
 0x38c   : > { %2170 = vmatmul.mubr.f32.gmra.mxu1 %v1847_v14 }
 0x38d   : > { %2172 = vmatprep.mubr.f32.mxu1 %v1850_v15 }
 0x390   : > { %2173 = vmatmul.mubr.f32.gmra.mxu1 %v1851_v17 }
 0x391   : > { %2175 = vmatprep.mubr.f32.mxu1 %v1854_v18 }
 0x394   : > { %2176 = vmatmul.mubr.f32.gmra.mxu1 %v1855_v22 }
 0x395   : > { %2178 = vmatprep.mubr.f32.mxu1 %v1858_v23 }
 0x398   : > { %2179 = vmatmul.mubr.f32.gmra.mxu1 %v1859_v25 }
 0x399   : > { %2181 = vmatprep.mubr.f32.mxu1 %v1862_v26 }
 0x39c   : > { %2182 = vmatmul.mubr.f32.gmra.mxu1 %v1863_v28 }
 0x39d   : > { %2184 = vmatprep.mubr.f32.mxu1 %v1866_v29 }
 0x3a0   : > { %2185 = vmatmul.mubr.f32.gmra.mxu1 %v1867_v30 }
 0x444   : > { %v2828_v20 = vpop.f32.mrf.mxu1 }
 0x445   : > { %v1249_v40 = vmul.f32 %v2828_v20, %v2828_v20 }
 0x446   : > { %v2830_v6 = vpop.f32.mrf.mxu1 }
 0x447   : > { %v1248_v41 = vmul.f32 %v2830_v6, %v2830_v6  ;;  %v1267_v43 = vsel %vm414_vm0, %v1249_v40, 0.0 }
 0x448   : > { %v2832_v8 = vpop.f32.mrf.mxu1 }
 0x449   : > { %v1251_v32 = vmul.f32 %v2832_v8, %v2832_v8  ;;  %v1264_v46 = vsel %vm414_vm0, %v1248_v41, 0.0 }
 0x44a   : > { %v2834_v9 = vpop.f32.mrf.mxu1 }
 0x44b   : > { %v1250_v37 = vmul.f32 %v2834_v9, %v2834_v9  ;;  %v1273_v50 = vsel %vm414_vm0, %v1251_v32, 0.0 }
 0x44c   : > { %v2836_v10 = vpop.f32.mrf.mxu1 }
 0x44d   : > { %v1253_v5 = vmul.f32 %v2836_v10, %v2836_v10  ;;  %v1270_v42 = vsel %vm414_vm0, %v1250_v37, 0.0 }
 0x44e   : > { %v2838_v11 = vpop.f32.mrf.mxu1 }
 0x44f   : > { %v1252_v21 = vmul.f32 %v2838_v11, %v2838_v11  ;;  %v1279_v35 = vsel %vm414_vm0, %v1253_v5, 0.0 }
 0x450   : > { %v2840_v12 = vpop.f32.mrf.mxu1 }
 0x451   : > { %v1255_v63 = vmul.f32 %v2840_v12, %v2840_v12  ;;  %v1276_v39 = vsel %vm414_vm0, %v1252_v21, 0.0 }
 0x452   : > { %v2842_v13 = vpop.f32.mrf.mxu1 }
 0x453   : > { %v1254_v2 = vmul.f32 %v2842_v13, %v2842_v13  ;;  %v1285_v31 = vsel %vm414_vm0, %v1255_v63, 0.0 }
 0x454   : > { %v2844_v14 = vpop.f32.mrf.mxu1 }
 0x455   : > { %v1257_v33 = vmul.f32 %v2844_v14, %v2844_v14  ;;  %v1282_v44 = vsel %vm414_vm0, %v1254_v2, 0.0 }
 0x456   : > { %v2846_v15 = vpop.f32.mrf.mxu1 }
 0x457   : > { %v1256_v61 = vmul.f32 %v2846_v15, %v2846_v15  ;;  %v1291_v1 = vsel %vm414_vm0, %v1257_v33, 0.0 }
 0x458   : > { %v2848_v16 = vpop.f32.mrf.mxu1 }
 0x459   : > { %v1259_v30 = vmul.f32 %v2848_v16, %v2848_v16  ;;  %v1288_v3 = vsel %vm414_vm0, %v1256_v61, 0.0 }
 0x45a   : > { %v2850_v17 = vpop.f32.mrf.mxu1 }
 0x45b   : > { %v1258_v4 = vmul.f32 %v2850_v17, %v2850_v17  ;;  %v1297_v38 = vsel %vm414_vm0, %v1259_v30, 0.0 }
 0x45c   : > { %v2852_v18 = vpop.f32.mrf.mxu1 }
 0x45d   : > { %v1261_v25 = vmul.f32 %v2852_v18, %v2852_v18  ;;  %v1294_v7 = vsel %vm414_vm0, %v1258_v4, 0.0 }
 0x45e   : > { %v2854_v19 = vpop.f32.mrf.mxu1 }
 0x45f   : > { %v1260_v28 = vmul.f32 %v2854_v19, %v2854_v19  ;;  %v1303_v58 = vsel %vm414_vm0, %v1261_v25, 0.0 }
 0x460   : > { %v2856_v22 = vpop.f32.mrf.mxu1 }
 0x461   : > { %v1263_v23 = vmul.f32 %v2856_v22, %v2856_v22  ;;  %v1300_v34 = vsel %vm414_vm0, %v1260_v28, 0.0 }
 0x462   : > { %v2860_v24 = vpop.f32.mrf.mxu1 }
 0x463   : > { %v1262_v26 = vmul.f32 %v2860_v24, %v2860_v24  ;;  %v1309_v27 = vsel %vm414_vm0, %v1263_v23, 0.0 }
 0x464   : > { %1310 = vadd.xlane.f32.xlu0 %v1309_v27 }
 0x465   : > { %v1306_v29 = vsel %vm414_vm0, %v1262_v26, 0.0 }
 0x466   : > { %1307 = vadd.xlane.f32.xlu1 %v1306_v29 }
 0x468   : > { %1304 = vadd.xlane.f32.xlu0 %v1303_v58 }
 0x46a   : > { %1301 = vadd.xlane.f32.xlu1 %v1300_v34 }
 0x46c   : > { %1298 = vadd.xlane.f32.xlu0 %v1297_v38 }
 0x46e   : > { %1295 = vadd.xlane.f32.xlu1 %v1294_v7 }
 0x470   : > { %1292 = vadd.xlane.f32.xlu0 %v1291_v1 }
 0x472   : > { %1289 = vadd.xlane.f32.xlu1 %v1288_v3 }
 0x474   : > { %1286 = vadd.xlane.f32.xlu0 %v1285_v31 }
 0x476   : > { %1283 = vadd.xlane.f32.xlu1 %v1282_v44 }
 0x478   : > { %1280 = vadd.xlane.f32.xlu0 %v1279_v35 }
 0x47a   : > { %1277 = vadd.xlane.f32.xlu1 %v1276_v39 }
 0x47c   : > { %1274 = vadd.xlane.f32.xlu0 %v1273_v50 }
 0x47e   : > { %1271 = vadd.xlane.f32.xlu1 %v1270_v42 }
 0x480   : > { %1268 = vadd.xlane.f32.xlu0 %v1267_v43 }
 0x482   : > { %1265 = vadd.xlane.f32.xlu1 %v1264_v46 }
 0x4ed   : > { %v1311_v56 = vpop.xlane.xlu0 %1310 }
 0x4ee   : > { %v1327_v47 = vmax.f32 %v1311_v56, 1e-24 }
 0x4ef   : > { %v1308_v48 = vpop.xlane.xlu1 %1307 }
 0x4f0   : > { %2328 = vrsqrt.f32 %v1327_v47  ;;  %v1326_v52 = vmax.f32 %v1308_v48, 1e-24 }
 0x4f1   : > { %v1305_v62 = vpop.xlane.xlu0 %1304 }
 0x4f2   : > { %2330 = vrsqrt.f32 %v1326_v52  ;;  %v1325_v49 = vmax.f32 %v1305_v62, 1e-24 }
 0x4f3   : > { %v1302_v51 = vpop.xlane.xlu1 %1301 }
 0x4f4   : > { %2332 = vrsqrt.f32 %v1325_v49  ;;  %v1324_v0 = vmax.f32 %v1302_v51, 1e-24  ;;  %v1431_v49 = vld [vmem:[%s3056_s5] sm:$0xff]  ;;  %v1826_v51 = vld [vmem:[%s3056_s5 + $0x38] sm:$0xff] }
 0x4f5   : > { %v1299_v36 = vpop.xlane.xlu0 %1298 }
 0x4f6   : > { %2334 = vrsqrt.f32 %v1324_v0  ;;  %v1323_v57 = vmax.f32 %v1299_v36, 1e-24 }
 0x4f7   : > { %v1296_v59 = vpop.xlane.xlu1 %1295 }
 0x4f8   : > { %2336 = vrsqrt.f32 %v1323_v57  ;;  %v1322_v54 = vmax.f32 %v1296_v59, 1e-24  ;;  %v1825_v57 = vld [vmem:[%s3056_s5 + $0x30] sm:$0xff]  ;;  %v1824_v59 = vld [vmem:[%s3056_s5 + $0x28] sm:$0xff] }
 0x4f9   : > { %v1293_v60 = vpop.xlane.xlu0 %1292 }
 0x4fa   : > { %2338 = vrsqrt.f32 %v1322_v54  ;;  %v1321_v55 = vmax.f32 %v1293_v60, 1e-24  ;;  %v1823_v54 = vld [vmem:[%s3056_s5 + $0x20] sm:$0xff] }
 0x4fb   : > { %v1290_v53 = vpop.xlane.xlu1 %1289  ;;  %v1821_v60 = vld [vmem:[%s3057_s6] ss:$0 sm:$0xff] }
 0x4fc   : > { %2340 = vrsqrt.f32 %v1321_v55  ;;  %v1320_v23 = vmax.f32 %v1290_v53, 1e-24 }
 0x4fd   : > { %v2329_v25 = vpop.eup %2328  ;;  %v1287_v26 = vpop.xlane.xlu0 %1286 }
 0x4fe   : > { %2342 = vrsqrt.f32 %v1320_v23  ;;  %v1319_v27 = vmax.f32 %v1287_v26, 1e-24  ;;  %v1359_v28 = vmul.f32 %v2329_v25, %v2856_v22  ;;  %v1606_v26 = vld [vmem:[%s3058_s7 + $0x18] sm:$0xff] }
 0x4ff   : > { %v2331_v29 = vpop.eup %2330  ;;  %v1284_v30 = vpop.xlane.xlu1 %1283 }
 0x500   : > { %2344 = vrsqrt.f32 %v1319_v27  ;;  %v1318_v58 = vmax.f32 %v1284_v30, 1e-24  ;;  %2188 = vmatpush3.msra.mxu0 %v1359_v28  ;;  %v1358_v4 = vmul.f32 %v2331_v29, %v2860_v24  ;;  %v1605_v27 = vld [vmem:[%s3058_s7 + $0x10] sm:$0xff]  ;;  %v1604_v28 = vld [vmem:[%s3058_s7 + $0x8] sm:$0xff]  ;;  %v1603_v29 = vld [vmem:[%s3058_s7] sm:$0xff] }
 0x501   : > { %v2333_v34 = vpop.eup %2332  ;;  %2189 = vmatprep.subr.mxu0 %v2422_v45  ;;  %v1281_v33 = vpop.xlane.xlu0 %1280  ;;  %v1828_v30 = vld [vmem:[%s3057_s6 + $0x1] ss:$0 sm:$0xff] }
 0x502   : > { %2346 = vrsqrt.f32 %v1318_v58  ;;  %v1317_v38 = vmax.f32 %v1281_v33, 1e-24  ;;  %2190 = vmatpush3.msra.mxu0 %v1358_v4  ;;  %v1357_v61 = vmul.f32 %v2333_v34, %v2852_v18 }
 0x503   : > { %v2335_v7 = vpop.eup %2334  ;;  %2191 = vmatprep.subr.mxu0 %v2422_v45  ;;  %v1278_v22 = vpop.xlane.xlu1 %1277 }
 0x504   : > { %2348 = vrsqrt.f32 %v1317_v38  ;;  %v1316_v63 = vmax.f32 %v1278_v22, 1e-24  ;;  %2192 = vmatpush3.msra.mxu0 %v1357_v61  ;;  %v1356_v1 = vmul.f32 %v2335_v7, %v2854_v19  ;;  %v1830_v38 = vld [vmem:[%s3059_s8] ss:$0 sm:$0xff] }
 0x505   : > { %v2337_v2 = vpop.eup %2336  ;;  %v1275_v24 = vpop.xlane.xlu0 %1274  ;;  %2193 = vmatprep.subr.mxu0 %v2422_v45 }
 0x506   : > { %2350 = vrsqrt.f32 %v1316_v63  ;;  %v1315_v3 = vmax.f32 %v1275_v24, 1e-24  ;;  %2194 = vmatpush3.msra.mxu0 %v1356_v1  ;;  %v1355_v5 = vmul.f32 %v2337_v2, %v2848_v16 }
 0x507   : > { %v2339_v31 = vpop.eup %2338  ;;  %2195 = vmatprep.subr.mxu0 %v2422_v45  ;;  %v1272_v18 = vpop.xlane.xlu1 %1271 }
 0x508   : > { %2352 = vrsqrt.f32 %v1315_v3  ;;  %v1314_v21 = vmax.f32 %v1272_v18, 1e-24  ;;  %2196 = vmatpush3.msra.mxu0 %v1355_v5  ;;  %v1354_v44 = vmul.f32 %v2339_v31, %v2850_v17 }
 0x509   : > { %v2341_v32 = vpop.eup %2340  ;;  %v1269_v19 = vpop.xlane.xlu0 %1268  ;;  %2197 = vmatprep.subr.mxu0 %v2422_v45 }
 0x50a   : > { %2354 = vrsqrt.f32 %v1314_v21  ;;  %v1313_v35 = vmax.f32 %v1269_v19, 1e-24  ;;  %2198 = vmatpush3.msra.mxu0 %v1354_v44  ;;  %v1353_v37 = vmul.f32 %v2341_v32, %v2844_v14 }
 0x50b   : > { %v2343_v39 = vpop.eup %2342  ;;  %2199 = vmatprep.subr.mxu0 %v2422_v45  ;;  %v1266_v16 = vpop.xlane.xlu1 %1265 }
 0x50c   : > { %2356 = vrsqrt.f32 %v1313_v35  ;;  %v1312_v40 = vmax.f32 %v1266_v16, 1e-24  ;;  %2200 = vmatpush3.msra.mxu0 %v1353_v37  ;;  %v1352_v50 = vmul.f32 %v2343_v39, %v2846_v15 }
 0x50d   : > { %v2345_v41 = vpop.eup %2344  ;;  %2201 = vmatprep.subr.mxu0 %v2422_v45 }
 0x50e   : > { %2358 = vrsqrt.f32 %v1312_v40  ;;  %2202 = vmatpush3.msra.mxu0 %v1352_v50  ;;  %v1351_v17 = vmul.f32 %v2345_v41, %v2840_v12 }
 0x50f   : > { %v2347_v42 = vpop.eup %2346  ;;  %2203 = vmatprep.subr.mxu0 %v2422_v45 }
 0x510   : > { %2204 = vmatpush3.msra.mxu0 %v1351_v17  ;;  %v1350_v14 = vmul.f32 %v2347_v42, %v2842_v13 }
 0x511   : > { %v2349_v43 = vpop.eup %2348  ;;  %2205 = vmatprep.subr.mxu0 %v2422_v45 }
 0x512   : > { %2206 = vmatpush3.msra.mxu0 %v1350_v14  ;;  %v1349_v46 = vmul.f32 %v2349_v43, %v2836_v10 }
 0x513   : > { %v2351_v15 = vpop.eup %2350  ;;  %2207 = vmatprep.subr.mxu0 %v2422_v45 }
 0x514   : > { %2208 = vmatpush3.msra.mxu0 %v1349_v46  ;;  %v1348_v56 = vmul.f32 %v2351_v15, %v2838_v11 }
 0x515   : > { %v2353_v47 = vpop.eup %2352  ;;  %2209 = vmatprep.subr.mxu0 %v2422_v45 }
 0x516   : > { %2210 = vmatpush3.msra.mxu0 %v1348_v56  ;;  %v1347_v12 = vmul.f32 %v2353_v47, %v2832_v8  ;;  %v1360_v8 = vld [vmem:[%s3053_s2] sm:$0xff] }
 0x517   : > { %v2355_v48 = vpop.eup %2354  ;;  %2211 = vmatprep.subr.mxu0 %v2422_v45 }
 0x518   : > { %2212 = vmatpush3.msra.mxu0 %v1347_v12  ;;  %v1346_v13 = vmul.f32 %v2355_v48, %v2834_v9  ;;  %v1434_v9 = vld [vmem:[%s3056_s5 + $0x18] sm:$0xff] }
 0x519   : > { %v2357_v52 = vpop.eup %2356  ;;  %2213 = vmatprep.subr.mxu0 %v2422_v45 }
 0x51a   : > { %2214 = vmatpush3.msra.mxu0 %v1346_v13  ;;  %v1345_v10 = vmul.f32 %v2357_v52, %v2828_v20  ;;  %v1433_v20 = vld [vmem:[%s3056_s5 + $0x10] sm:$0xff] }
 0x51b   : > { %v2359_v62 = vpop.eup %2358  ;;  %2215 = vmatprep.subr.mxu0 %v2422_v45 }
 0x51c   : > { %2216 = vmatpush3.msra.mxu0 %v1345_v10  ;;  %v1344_v11 = vmul.f32 %v2359_v62, %v2830_v6  ;;  %v1432_v6 = vld [vmem:[%s3056_s5 + $0x8] sm:$0xff] }
 0x51d   : > { %2217 = vmatprep.subr.mxu0 %v2422_v45 }
 0x51e   : > { %2218 = vmatpush3.msra.mxu0 %v1344_v11 }
 0x51f   : > { %2220 = vmatmul.mubr.f32.vlgmr.msra.gmra.mxu0 %v1360_v8  ;;  %2222 = vmatprep.subr.mxu0 %v2422_v45 }
 0x520   : > { %2223 = vmatpush3.msra.mxu0 %v1434_v9  ;;  %2230 = vmatprep.mubr.msk.f32.mxu0 %vm2423_vm1, %v2422_v45 }
 0x521   : > { %2224 = vmatprep.subr.mxu0 %v2422_v45 }
 0x522   : > { %2225 = vmatpush3.msra.mxu0 %v1433_v20 }
 0x523   : > { %2226 = vmatprep.subr.mxu0 %v2422_v45 }
 0x524   : > { %2227 = vmatpush3.msra.mxu0 %v1432_v6 }
 0x525   : > { %2228 = vmatprep.subr.mxu0 %v2422_v45 }
 0x526   : > { %2229 = vmatpush3.msra.mxu0 %v1431_v49 }
 0x527   : > { %2233 = vmatprep.subr.mxu0 %v2422_v45 }
 0x5df   : > { %v1427_v0 = vpop.f32.mrf.mxu0 }
 0x5e0   : > { %2231 = vmatmul.mubr.msk.f32.vlgmr.msra.gmra.mxu0 %vm414_vm0, %v1427_v0 }
 0x5e1   : > { %v2221_v36 = vpop.f32.mrf.mxu0  ;;  %2234 = vmatpush3.msra.mxu0 %v1826_v51  ;;  %2241 = vmatprep.mubr.msk.f32.mxu0 %vm2423_vm1, %v2422_v45 }
 0x5e2   : > { %2235 = vmatprep.subr.mxu0 %v2422_v45 }
 0x5e3   : > { %2236 = vmatpush3.msra.mxu0 %v1825_v57 }
 0x5e4   : > { %2237 = vmatprep.subr.mxu0 %v2422_v45 }
 0x5e5   : > { %2238 = vmatpush3.msra.mxu0 %v1824_v59 }
 0x5e6   : > { %2239 = vmatprep.subr.mxu0 %v2422_v45 }
 0x5e7   : > { %2240 = vmatpush3.msra.mxu0 %v1823_v54 }
 0x5e8   : > { %2244 = vmatprep.subr.mxu0 %v2422_v45 }
 0x6a0   : > { %v1511_v55 = vpop.f32.mrf.mxu0 }
 0x6a1   : > { %v1512_v53 = vadd.f32 %v1821_v60, %v1511_v55 }
 0x6a2   : > { %v2232_v23 = vpop.f32.mrf.mxu0 }
 0x6a3   : > { %v1515_v25 = vmax.f32 %v1512_v53, 0.0 }
 0x6a5   : > { %2242 = vmatmul.mubr.msk.f32.vlgmr.msra.gmra.mxu0 %vm414_vm0, %v1515_v25 }
 0x6a6   : > { %2245 = vmatpush3.msra.mxu0 %v1606_v26  ;;  %2252 = vmatprep.mubr.msk.f32.mxu0 %vm2423_vm1, %v2422_v45 }
 0x6a7   : > { %2246 = vmatprep.subr.mxu0 %v2422_v45 }
 0x6a8   : > { %2247 = vmatpush3.msra.mxu0 %v1605_v27 }
 0x6a9   : > { %2248 = vmatprep.subr.mxu0 %v2422_v45 }
 0x6aa   : > { %2249 = vmatpush3.msra.mxu0 %v1604_v28 }
 0x6ab   : > { %2250 = vmatprep.subr.mxu0 %v2422_v45 }
 0x6ac   : > { %2251 = vmatpush3.msra.mxu0 %v1603_v29 }
 0x765   : > { %v1598_v58 = vpop.f32.mrf.mxu0 }
 0x766   : > { %v1599_v4 = vadd.f32 %v1828_v30, %v1598_v58 }
 0x767   : > { %v2243_v34 = vpop.f32.mrf.mxu0 }
 0x768   : > { %v1602_v33 = vmax.f32 %v1599_v4, 0.0 }
 0x76a   : > { %2253 = vmatmul.mubr.msk.f32.vlgmr.msra.gmra.mxu0 %vm414_vm0, %v1602_v33 }
 0x82a   : > { %v1683_v45 = vpop.f32.mrf.mxu0 }
 0x82b   : > { %v1684_v61 = vadd.f32 %v1830_v38, %v1683_v45 }
 0x82c   : > { %v2254_v7 = vpop.f32.mrf.mxu0 }
 0x82d   : > { %1687 = vst [vmem:[%s342_s26] sm:$0xff] %v1684_v61 }
 0x82e   : > { %2373 = shalt.err (!%p2370_p3)
}
 0x82f   : > { %s2374_s23 = scalar_lea.hbm %s3016_s29, 128  ;;  %s2378_s26 = scalar_lea.hbm %s3060_s9, 384 }
 0x830   : > { %p2375_p4 = scmp.ne.s32.totalorder %s3016_s29, %s2374_s23  ;;  %p2379_p9 = scmp.lt.s32.totalorder %s3016_s29, %s3060_s9 }
 0x831   : > { %p2380_p10 = scmp.lt.s32.totalorder %s2378_s26, %s2374_s23 }
 0x832   : > { %p2376_p7 = pnand %p2375_p4, %p2513_p5 }
 0x833   : > { %p2381_p11 = por %p2380_p10, %p2379_p9 }
 0x834   : > { %p2377_p8 = pneg %p2376_p7 }
 0x836   : > { %p2382_p12 = pnand %p2381_p11, %p2377_p8 }
 0x838   : > { %2385 = shalt.err (!%p2382_p12)
}
 0x839   : > { %2255 = dma.vmem_to_hbm [thread:$0]  (%p2513_p5), %s1703_s25, 128, %s3016_s29, %s1689_s14  }
 0x83a PF: > { %p2261_p13 = scmp.ge.s32.totalorder %s2420_s12, 2  ;;  %s1714_s16 = sand.u32 1, %s2408_s30  }
 0x83b   : > { %s1715_s22 = scalar_lea.sflag [#allocation3], %s1714_s16 }
 0x83c   : > { %p2258_p0 = pnand %p2261_p13, %p2517_p6 }
 0x83e   : > { %p2259_p1 = pneg %p2258_p0 }
 0x840   : > { %2403 = dma.done.wait (%p2259_p1), %s1715_s22, 128  }
 0x841   : > { %2405 = vsyncadd (%p2259_p1), %s1715_s22, 4294967168  ;;  %p19_p2 = scmp.ge.s32.totalorder %s2500_s15, 5   ;;  %s3063_s30 = smov %s2412_s10 }
 0x842   : > { %s3064_s10 = smov %s2416_s11  ;;  %s3065_s11 = smov %s2511_s18 }
 0x843   : > { %s3066_s12 = smov %s2500_s15  ;;  %21 = sbr.rel (!%p19_p2) target bundleno = 3 (0x3), region = 98 }
 0x848   :  { %1720 = vsyncpa [#allocation3], 1 }
 0x849   :  { %1722 = vsyncpa [#allocation3 + $0x1], 1 }

</bundles_post_ra>
